<compile_context>
chip_gen: v6e
topology: v6e:2x2x1
jax: 0.10.0
libtpu: 0.0.40
codegen_flags: <defaults>
</compile_context>

<pallas_src>
import functools

import jax
import jax.numpy as jnp
from jax.experimental import pallas as pl
from jax.experimental.pallas import tpu as pltpu


def _round_up(x, m):
    return ((x + m - 1) // m) * m


def _maxout_kernel(x_ref, w_ref, b_ref, o_ref, *, n_pieces):
    # x_ref: (tb, K)   w_ref: (P, K, tn)   b_ref: (P, 1, tn)   o_ref: (tb, tn)
    x = x_ref[...]                       # load once, reused for all pieces
    acc = None
    for p in range(n_pieces):            # P is small & static -> fully unrolled
        y = jnp.dot(x, w_ref[p], preferred_element_type=jnp.float32)
        y = y + b_ref[p]                 # (1, tn) broadcasts over batch rows
        acc = y if acc is None else jnp.maximum(acc, y)
    o_ref[...] = acc.astype(o_ref.dtype)


def maxout_forward(x, weight, bias=None, *, block_b=256, block_n=256):
    """Maxout forward.

    x: (B, n_inputs); weight: (P, n_outputs, n_inputs); bias: (P, n_outputs) or None.
    Returns (B, n_outputs): max over pieces of x @ W[p].T + b[p].
    """
    B, n_in = x.shape
    P, n_out, _ = weight.shape
    out_dtype = x.dtype

    if bias is None:
        bias = jnp.zeros((P, n_out), dtype=weight.dtype)

    # ---- one-time wrapper-side layout prep (plain XLA ops, outside kernel) ----
    w_t = jnp.transpose(weight, (0, 2, 1))          # (P, n_in, n_out): [K, N] feed
    b_r = bias[:, None, :]                          # (P, 1, n_out)

    # Tile sizes: batch tile multiple of 8 sublanes, output tile multiple of
    # 128 lanes (lane-dense stores); contraction dim lane-aligned to 128.
    tb = min(block_b, _round_up(B, 8))
    tn = min(block_n, _round_up(n_out, 128))
    B_p = _round_up(B, tb)
    N_p = _round_up(n_out, tn)
    K_p = _round_up(n_in, 128)

    x_p = jnp.pad(x, ((0, B_p - B), (0, K_p - n_in)))
    w_p = jnp.pad(w_t, ((0, 0), (0, K_p - n_in), (0, N_p - n_out)))
    b_p = jnp.pad(b_r, ((0, 0), (0, 0), (0, N_p - n_out)))

    grid = (B_p // tb, N_p // tn)
    itemsize = jnp.dtype(x_p.dtype).itemsize

    # Advisory cost hint for XLA scheduling (weights re-streamed per batch tile).
    flops = 2 * B_p * K_p * N_p * P
    bytes_accessed = (
        x_p.size * itemsize * (N_p // tn)
        + (w_p.size + b_p.size) * itemsize * (B_p // tb)
        + B_p * N_p * itemsize
    )

    kernel = functools.partial(_maxout_kernel, n_pieces=P)

    out = pl.pallas_call(
        kernel,
        out_shape=jax.ShapeDtypeStruct((B_p, N_p), out_dtype),
        grid_spec=pltpu.PrefetchScalarGridSpec(
            num_scalar_prefetch=0,
            grid=grid,
            in_specs=[
                pl.BlockSpec((tb, K_p), lambda i, j: (i, 0)),       # x batch tile
                pl.BlockSpec((P, K_p, tn), lambda i, j: (0, 0, j)),  # all pieces, N tile
                pl.BlockSpec((P, 1, tn), lambda i, j: (0, 0, j)),    # bias, N tile
            ],
            out_specs=pl.BlockSpec((tb, tn), lambda i, j: (i, j)),
        ),
        compiler_params=pltpu.CompilerParams(
            dimension_semantics=("parallel", "parallel"),  # megacore over B/N tiles
            vmem_limit_bytes=64 * 1024 * 1024,             # v7x VMEM budget
        ),
        cost_estimate=pl.CostEstimate(
            flops=flops, transcendentals=0, bytes_accessed=bytes_accessed),
    )(x_p, w_p, b_p)

    return out[:B, :n_out]


if __name__ == "__main__":
    # Small shapes consistent with the module's forward.
    B, n_inputs, n_outputs, n_pieces = 8, 32, 16, 3

    key = jax.random.PRNGKey(0)
    kx, kw, kb = jax.random.split(key, 3)

    # Deterministic init mirroring reset_parameters(): U(-stdv, stdv),
    # stdv = 1 / sqrt(weight.size(1)) = 1 / sqrt(n_outputs)
    stdv = 1.0 / (n_outputs ** 0.5)
    weight = jax.random.uniform(
        kw, (n_pieces, n_outputs, n_inputs), jnp.float32, minval=-stdv, maxval=stdv)
    bias = jax.random.uniform(
        kb, (n_pieces, n_outputs), jnp.float32, minval=-stdv, maxval=stdv)

    x = jax.random.normal(kx, (B, n_inputs), jnp.float32)

    out = maxout_forward(x, weight, bias)
    out = jax.block_until_ready(out)

    # Plain-JAX reference (same math as the PyTorch forward).
    ref = jnp.max(
        jnp.einsum("bi,poi->pbo", x, weight) + bias[:, None, :], axis=0)
    assert out.shape == (B, n_outputs)
    assert jnp.allclose(out, ref, atol=1e-5, rtol=1e-5)

    print("KERNEL_OK")
</pallas_src>

<mosaic_0001>
module attributes {stable_mosaic.version = 11 : i64} {
  func.func @_maxout_kernel(%arg0: i32, %arg1: i32, %arg2: memref<8x128xf32, #tpu.memory_space<vmem>>, %arg3: memref<3x128x128xf32, #tpu.memory_space<vmem>>, %arg4: memref<3x1x128xf32, #tpu.memory_space<vmem>>, %arg5: memref<8x128xf32, #tpu.memory_space<vmem>>) attributes {dimension_semantics = [#tpu.dimension_semantics<parallel>, #tpu.dimension_semantics<parallel>], iteration_bounds = array<i64: 1, 1>, scalar_prefetch = 0 : i64, scratch_operands = 0 : i64, tpu.core_type = #tpu.core_type<tc>, window_params = [{transform_indices = @transform_0, window_bounds = array<i64: 8, 128>}, {transform_indices = @transform_1, window_bounds = array<i64: 3, 128, 128>}, {transform_indices = @transform_2, window_bounds = array<i64: 3, 1, 128>}, {transform_indices = @transform_3, window_bounds = array<i64: 8, 128>}]} {
    %c0 = arith.constant 0 : index
    %c0_0 = arith.constant 0 : index
    %0 = vector.load %arg2[%c0, %c0_0] : memref<8x128xf32, #tpu.memory_space<vmem>>, vector<8x128xf32>
    %c0_1 = arith.constant 0 : index
    %c0_2 = arith.constant 0 : index
    %c0_3 = arith.constant 0 : index
    %1 = vector.load %arg3[%c0_1, %c0_2, %c0_3] : memref<3x128x128xf32, #tpu.memory_space<vmem>>, vector<1x128x128xf32>
    %2 = vector.shape_cast %1 : vector<1x128x128xf32> to vector<128x128xf32>
    %cst = arith.constant dense<0.000000e+00> : vector<8x128xf32>
    %3 = tpu.matmul %0, %2, %cst {dimension_numbers = #tpu.dot_dimension_numbers<[1], [0], [0], [1], [0, 0, 1, 1], [], []>} : vector<8x128xf32>, vector<128x128xf32>, vector<8x128xf32> -> vector<8x128xf32>
    %c0_4 = arith.constant 0 : index
    %c0_5 = arith.constant 0 : index
    %c0_6 = arith.constant 0 : index
    %4 = vector.load %arg4[%c0_4, %c0_5, %c0_6] : memref<3x1x128xf32, #tpu.memory_space<vmem>>, vector<1x1x128xf32>
    %5 = vector.shape_cast %4 : vector<1x1x128xf32> to vector<1x128xf32>
    %6 = vector.broadcast %5 : vector<1x128xf32> to vector<8x128xf32>
    %7 = arith.addf %3, %6 : vector<8x128xf32>
    %c1 = arith.constant 1 : index
    %c0_7 = arith.constant 0 : index
    %c0_8 = arith.constant 0 : index
    %8 = vector.load %arg3[%c1, %c0_7, %c0_8] : memref<3x128x128xf32, #tpu.memory_space<vmem>>, vector<1x128x128xf32>
    %9 = vector.shape_cast %8 : vector<1x128x128xf32> to vector<128x128xf32>
    %cst_9 = arith.constant dense<0.000000e+00> : vector<8x128xf32>
    %10 = tpu.matmul %0, %9, %cst_9 {dimension_numbers = #tpu.dot_dimension_numbers<[1], [0], [0], [1], [0, 0, 1, 1], [], []>} : vector<8x128xf32>, vector<128x128xf32>, vector<8x128xf32> -> vector<8x128xf32>
    %c1_10 = arith.constant 1 : index
    %c0_11 = arith.constant 0 : index
    %c0_12 = arith.constant 0 : index
    %11 = vector.load %arg4[%c1_10, %c0_11, %c0_12] : memref<3x1x128xf32, #tpu.memory_space<vmem>>, vector<1x1x128xf32>
    %12 = vector.shape_cast %11 : vector<1x1x128xf32> to vector<1x128xf32>
    %13 = vector.broadcast %12 : vector<1x128xf32> to vector<8x128xf32>
    %14 = arith.addf %10, %13 : vector<8x128xf32>
    %15 = arith.maximumf %7, %14 : vector<8x128xf32>
    %c2 = arith.constant 2 : index
    %c0_13 = arith.constant 0 : index
    %c0_14 = arith.constant 0 : index
    %16 = vector.load %arg3[%c2, %c0_13, %c0_14] : memref<3x128x128xf32, #tpu.memory_space<vmem>>, vector<1x128x128xf32>
    %17 = vector.shape_cast %16 : vector<1x128x128xf32> to vector<128x128xf32>
    %cst_15 = arith.constant dense<0.000000e+00> : vector<8x128xf32>
    %18 = tpu.matmul %0, %17, %cst_15 {dimension_numbers = #tpu.dot_dimension_numbers<[1], [0], [0], [1], [0, 0, 1, 1], [], []>} : vector<8x128xf32>, vector<128x128xf32>, vector<8x128xf32> -> vector<8x128xf32>
    %c2_16 = arith.constant 2 : index
    %c0_17 = arith.constant 0 : index
    %c0_18 = arith.constant 0 : index
    %19 = vector.load %arg4[%c2_16, %c0_17, %c0_18] : memref<3x1x128xf32, #tpu.memory_space<vmem>>, vector<1x1x128xf32>
    %20 = vector.shape_cast %19 : vector<1x1x128xf32> to vector<1x128xf32>
    %21 = vector.broadcast %20 : vector<1x128xf32> to vector<8x128xf32>
    %22 = arith.addf %18, %21 : vector<8x128xf32>
    %23 = arith.maximumf %15, %22 : vector<8x128xf32>
    %c0_19 = arith.constant 0 : index
    %c0_20 = arith.constant 0 : index
    %24 = vector.load %arg5[%c0_19, %c0_20] : memref<8x128xf32, #tpu.memory_space<vmem>>, vector<8x128xf32>
    tpu.vector_store %arg5[%c0_19, %c0_20], %23 {strides = array<i32>} : memref<8x128xf32, #tpu.memory_space<vmem>>, vector<8x128xf32>,
    return
  }
  func.func @transform_0(%arg0: i32, %arg1: i32) -> (i32, i32) {
    %c0_i32 = arith.constant 0 : i32
    %c0_i32_0 = arith.constant 0 : i32
    return %arg0, %c0_i32 : i32, i32
  }
  func.func @transform_1(%arg0: i32, %arg1: i32) -> (i32, i32, i32) {
    %c0_i32 = arith.constant 0 : i32
    %c0_i32_0 = arith.constant 0 : i32
    %c0_i32_1 = arith.constant 0 : i32
    return %c0_i32, %c0_i32_0, %arg1 : i32, i32, i32
  }
  func.func @transform_2(%arg0: i32, %arg1: i32) -> (i32, i32, i32) {
    %c0_i32 = arith.constant 0 : i32
    %c0_i32_0 = arith.constant 0 : i32
    %c0_i32_1 = arith.constant 0 : i32
    return %c0_i32, %c0_i32_0, %arg1 : i32, i32, i32
  }
  func.func @transform_3(%arg0: i32, %arg1: i32) -> (i32, i32) {
    %c0_i32 = arith.constant 0 : i32
    return %arg0, %arg1 : i32, i32
  }
}

</mosaic_0001>

<bundles_post_ra>
// kernel: tpu_custom_call.1
= control target key start
LH: loop header
LB: loop body
LE: loop exit
PB: predicated region body
PF: predicated region fallthrough
CT: control target
= control target key end

     0   :  { %8 = vsyncpa [#allocation3], 0  ;;  %s677_s0 = inlined_call_operand.hbm [shape: f32[8,128], index: 0, kind: input, shape index: {}]   ;;  %s678_s1 = inlined_call_operand.hbm [shape: f32[3,128,128], index: 1, kind: input, shape index: {}]   ;;  %s679_s2 = inlined_call_operand.vmem [shape: f32[3,1,128], index: 2, kind: input, shape index: {}]   ;;  %s680_s3 = inlined_call_operand.hbm [shape: f32[8,128], index: 3, kind: output, shape index: {}]  }
   0x1   :  { %9 = vsyncpa [#allocation6], 0 }
   0x2   :  { %10 = vsyncpa [#allocation4], 0  ;;  %s578_s12 = smov [#allocation2]   ;;  %s579_s14 = smov [#allocation5]  }
   0x3   :  { %s17_s13 = sshll.u32 %s578_s12, 4  ;;  %s26_s15 = sshll.u32 %s579_s14, 4  ;;  %s18_s13 = int_to_ptr.vmem [resolvable:$true] %s17_s13  ;;  %s27_s15 = int_to_ptr.vmem [resolvable:$true] %s26_s15 }
   0x4   :  { %s520_s16 = scalar_lea.vmem %s18_s13, 128  ;;  %p525_p1 = scmp.lt.s32.totalorder %s18_s13, %s18_s13 }
   0x5   :  { %p521_p0 = scmp.ne.s32.totalorder %s18_s13, %s520_s16  ;;  %p526_p2 = scmp.lt.s32.totalorder %s520_s16, %s520_s16 }
   0x7   :  { %p527_p3 = por %p526_p2, %p525_p1 }
   0x9   :  { %p528_p4 = pnand %p527_p3, %p521_p0 }
   0xb   :  { %531 = shalt.err (!%p528_p4)
}
   0xc   :  { %20 = dma.hbm_to_vmem [thread:$0]  %s677_s0, 128, %s18_s13, [#allocation3]  }
   0xd   :  { %s540_s19 = scalar_lea.vmem %s27_s15, 6144  ;;  %p545_p6 = scmp.lt.s32.totalorder %s27_s15, %s27_s15 }
   0xe   :  { %p541_p5 = scmp.ne.s32.totalorder %s27_s15, %s540_s19  ;;  %p546_p7 = scmp.lt.s32.totalorder %s540_s19, %s540_s19 }
  0x10   :  { %p547_p8 = por %p546_p7, %p545_p6 }
  0x12   :  { %p548_p9 = pnand %p547_p8, %p541_p5 }
  0x14   :  { %551 = shalt.err (!%p548_p9)
}
  0x15   :  { %s580_s20 = smov 128   ;;  %s581_s21 = smov 8  }
  0x16   :  { %32 = dma.hbm_to_vmem [thread:$0]  %s678_s1, 6144, %s27_s15, [#allocation6], %s580_s20, %s580_s20, %s581_s21  }
  0x17   :  { %572 = dma.done.wait [#allocation3], 128  }
  0x18   :  { %573 = vsyncadd [#allocation3], 4294967168 }
  0x19   :  { %574 = dma.done.wait [#allocation6], 6144  }
  0x1a   :  { %575 = vsyncadd [#allocation6], 4294961152  ;;  %v582_v0 = vmov 0.0   ;;  %vm583_vm0 = vmmov 0   ;;  %v57_v1 = vld [vmem:[#allocation5 + $0x78] sm:$0xff]  ;;  %v56_v3 = vld [vmem:[#allocation5 + $0x70] sm:$0xff] }
  0x1b   :  { %400 = vmatprep.subr.mxu0 %v582_v0  ;;  %435 = vmatprep.subr.mxu1 %v582_v0  ;;  %v151_v2 = vld [vmem:[#allocation5 + $0xf8] sm:$0xff]  ;;  %v150_v4 = vld [vmem:[#allocation5 + $0xf0] sm:$0xff]  ;;  %v55_v5 = vld [vmem:[#allocation5 + $0x68] sm:$0xff]  ;;  %s584_s28 = smov [#allocation7]  }
  0x1c   :  { %432 = vmatprep.mubr.msk.f32.mxu0 %vm583_vm0, %v582_v0  ;;  %467 = vmatprep.mubr.msk.f32.mxu1 %vm583_vm0, %v582_v0  ;;  %v149_v6 = vld [vmem:[#allocation5 + $0xe8] sm:$0xff]  ;;  %v54_v7 = vld [vmem:[#allocation5 + $0x60] sm:$0xff]  ;;  %v53_v9 = vld [vmem:[#allocation5 + $0x58] sm:$0xff]  ;;  %s334_s29 = sshll.u32 %s584_s28, 4  ;;  %s335_s29 = int_to_ptr.vmem [resolvable:$true] %s334_s29 }
  0x1d   :  { %401 = vmatpush3.msra.mxu0 %v57_v1  ;;  %436 = vmatpush3.msra.mxu1 %v151_v2  ;;  %v148_v8 = vld [vmem:[#allocation5 + $0xe0] sm:$0xff]  ;;  %v147_v10 = vld [vmem:[#allocation5 + $0xd8] sm:$0xff]  ;;  %v52_v11 = vld [vmem:[#allocation5 + $0x50] sm:$0xff]  ;;  %s552_s30 = scalar_lea.vmem %s335_s29, 128  ;;  %p557_p11 = scmp.lt.s32.totalorder %s335_s29, %s335_s29 }
  0x1e   :  { %402 = vmatprep.subr.mxu0 %v582_v0  ;;  %437 = vmatprep.subr.mxu1 %v582_v0  ;;  %v146_v12 = vld [vmem:[#allocation5 + $0xd0] sm:$0xff]  ;;  %v51_v13 = vld [vmem:[#allocation5 + $0x48] sm:$0xff]  ;;  %v50_v15 = vld [vmem:[#allocation5 + $0x40] sm:$0xff]  ;;  %p553_p10 = scmp.ne.s32.totalorder %s335_s29, %s552_s30  ;;  %p558_p12 = scmp.lt.s32.totalorder %s552_s30, %s552_s30 }
  0x1f   :  { %403 = vmatpush3.msra.mxu0 %v56_v3  ;;  %438 = vmatpush3.msra.mxu1 %v150_v4  ;;  %v145_v14 = vld [vmem:[#allocation5 + $0xc8] sm:$0xff]  ;;  %v144_v16 = vld [vmem:[#allocation5 + $0xc0] sm:$0xff]  ;;  %v49_v17 = vld [vmem:[#allocation5 + $0x38] sm:$0xff] }
  0x20   :  { %404 = vmatprep.subr.mxu0 %v582_v0  ;;  %439 = vmatprep.subr.mxu1 %v582_v0  ;;  %v143_v18 = vld [vmem:[#allocation5 + $0xb8] sm:$0xff]  ;;  %v48_v19 = vld [vmem:[#allocation5 + $0x30] sm:$0xff]  ;;  %v47_v21 = vld [vmem:[#allocation5 + $0x28] sm:$0xff]  ;;  %p559_p13 = por %p558_p12, %p557_p11 }
  0x21   :  { %405 = vmatpush3.msra.mxu0 %v55_v5  ;;  %440 = vmatpush3.msra.mxu1 %v149_v6  ;;  %v142_v20 = vld [vmem:[#allocation5 + $0xb0] sm:$0xff]  ;;  %v141_v22 = vld [vmem:[#allocation5 + $0xa8] sm:$0xff]  ;;  %v46_v23 = vld [vmem:[#allocation5 + $0x20] sm:$0xff] }
  0x22   :  { %406 = vmatprep.subr.mxu0 %v582_v0  ;;  %441 = vmatprep.subr.mxu1 %v582_v0  ;;  %v140_v24 = vld [vmem:[#allocation5 + $0xa0] sm:$0xff]  ;;  %v45_v25 = vld [vmem:[#allocation5 + $0x18] sm:$0xff]  ;;  %v44_v27 = vld [vmem:[#allocation5 + $0x10] sm:$0xff]  ;;  %p560_p0 = pnand %p559_p13, %p553_p10 }
  0x23   :  { %407 = vmatpush3.msra.mxu0 %v54_v7  ;;  %442 = vmatpush3.msra.mxu1 %v148_v8  ;;  %v139_v26 = vld [vmem:[#allocation5 + $0x98] sm:$0xff]  ;;  %v138_v28 = vld [vmem:[#allocation5 + $0x90] sm:$0xff]  ;;  %v43_v29 = vld [vmem:[#allocation5 + $0x8] sm:$0xff] }
  0x24   :  { %408 = vmatprep.subr.mxu0 %v582_v0  ;;  %443 = vmatprep.subr.mxu1 %v582_v0  ;;  %v137_v30 = vld [vmem:[#allocation5 + $0x88] sm:$0xff]  ;;  %v42_v31 = vld [vmem:[#allocation5] sm:$0xff]  ;;  %v41_v33 = vld [vmem:[#allocation2] sm:$0xff] }
  0x25   :  { %409 = vmatpush3.msra.mxu0 %v53_v9  ;;  %444 = vmatpush3.msra.mxu1 %v147_v10  ;;  %v136_v32 = vld [vmem:[#allocation5 + $0x80] sm:$0xff]  ;;  %v247_v34 = vld [vmem:[#allocation5 + $0x178] sm:$0xff]  ;;  %v246_v35 = vld [vmem:[#allocation5 + $0x170] sm:$0xff] }
  0x26   :  { %410 = vmatprep.subr.mxu0 %v582_v0  ;;  %445 = vmatprep.subr.mxu1 %v582_v0  ;;  %v245_v36 = vld [vmem:[#allocation5 + $0x168] sm:$0xff]  ;;  %v244_v37 = vld [vmem:[#allocation5 + $0x160] sm:$0xff]  ;;  %v243_v38 = vld [vmem:[#allocation5 + $0x158] sm:$0xff] }
  0x27   :  { %411 = vmatpush3.msra.mxu0 %v52_v11  ;;  %446 = vmatpush3.msra.mxu1 %v146_v12  ;;  %v242_v39 = vld [vmem:[#allocation5 + $0x150] sm:$0xff]  ;;  %v241_v40 = vld [vmem:[#allocation5 + $0x148] sm:$0xff]  ;;  %v240_v41 = vld [vmem:[#allocation5 + $0x140] sm:$0xff] }
  0x28   :  { %412 = vmatprep.subr.mxu0 %v582_v0  ;;  %447 = vmatprep.subr.mxu1 %v582_v0  ;;  %v239_v42 = vld [vmem:[#allocation5 + $0x138] sm:$0xff]  ;;  %v238_v43 = vld [vmem:[#allocation5 + $0x130] sm:$0xff]  ;;  %v237_v44 = vld [vmem:[#allocation5 + $0x128] sm:$0xff] }
  0x29   :  { %413 = vmatpush3.msra.mxu0 %v51_v13  ;;  %448 = vmatpush3.msra.mxu1 %v145_v14  ;;  %v236_v45 = vld [vmem:[#allocation5 + $0x120] sm:$0xff]  ;;  %v235_v46 = vld [vmem:[#allocation5 + $0x118] sm:$0xff]  ;;  %v234_v47 = vld [vmem:[#allocation5 + $0x110] sm:$0xff] }
  0x2a   :  { %414 = vmatprep.subr.mxu0 %v582_v0  ;;  %449 = vmatprep.subr.mxu1 %v582_v0  ;;  %v233_v48 = vld [vmem:[#allocation5 + $0x108] sm:$0xff]  ;;  %v232_v49 = vld [vmem:[#allocation5 + $0x100] sm:$0xff]  ;;  %v344_v54 = vld [vmem:[%s679_s2] ss:$0 sm:$0xff] }
  0x2b   :  { %415 = vmatpush3.msra.mxu0 %v50_v15  ;;  %450 = vmatpush3.msra.mxu1 %v144_v16  ;;  %v346_v55 = vld [vmem:[%s679_s2 + $0x1] ss:$0 sm:$0xff]  ;;  %v348_v58 = vld [vmem:[%s679_s2 + $0x2] ss:$0 sm:$0xff] }
  0x2c   :  { %416 = vmatprep.subr.mxu0 %v582_v0  ;;  %451 = vmatprep.subr.mxu1 %v582_v0 }
  0x2d   :  { %417 = vmatpush3.msra.mxu0 %v49_v17  ;;  %452 = vmatpush3.msra.mxu1 %v143_v18 }
  0x2e   :  { %418 = vmatprep.subr.mxu0 %v582_v0  ;;  %453 = vmatprep.subr.mxu1 %v582_v0 }
  0x2f   :  { %419 = vmatpush3.msra.mxu0 %v48_v19  ;;  %454 = vmatpush3.msra.mxu1 %v142_v20 }
  0x30   :  { %420 = vmatprep.subr.mxu0 %v582_v0  ;;  %455 = vmatprep.subr.mxu1 %v582_v0 }
  0x31   :  { %421 = vmatpush3.msra.mxu0 %v47_v21  ;;  %456 = vmatpush3.msra.mxu1 %v141_v22 }
  0x32   :  { %422 = vmatprep.subr.mxu0 %v582_v0  ;;  %457 = vmatprep.subr.mxu1 %v582_v0 }
  0x33   :  { %423 = vmatpush3.msra.mxu0 %v46_v23  ;;  %458 = vmatpush3.msra.mxu1 %v140_v24 }
  0x34   :  { %424 = vmatprep.subr.mxu0 %v582_v0  ;;  %459 = vmatprep.subr.mxu1 %v582_v0 }
  0x35   :  { %425 = vmatpush3.msra.mxu0 %v45_v25  ;;  %460 = vmatpush3.msra.mxu1 %v139_v26 }
  0x36   :  { %426 = vmatprep.subr.mxu0 %v582_v0  ;;  %461 = vmatprep.subr.mxu1 %v582_v0 }
  0x37   :  { %427 = vmatpush3.msra.mxu0 %v44_v27  ;;  %462 = vmatpush3.msra.mxu1 %v138_v28 }
  0x38   :  { %428 = vmatprep.subr.mxu0 %v582_v0  ;;  %463 = vmatprep.subr.mxu1 %v582_v0 }
  0x39   :  { %429 = vmatpush3.msra.mxu0 %v43_v29  ;;  %464 = vmatpush3.msra.mxu1 %v137_v30 }
  0x3a   :  { %430 = vmatprep.subr.mxu0 %v582_v0  ;;  %465 = vmatprep.subr.mxu1 %v582_v0 }
  0x3b   :  { %431 = vmatpush3.msra.mxu0 %v42_v31  ;;  %466 = vmatpush3.msra.mxu1 %v136_v32 }
  0x3c   :  { %433 = vmatmul.mubr.f32.vlgmr.msra.gmra.mxu0 %v41_v33  ;;  %470 = vmatprep.subr.mxu0 %v582_v0 }
  0x3d   :  { %468 = vmatmul.mubr.f32.vlgmr.msra.gmra.mxu1 %v41_v33  ;;  %471 = vmatpush3.msra.mxu0 %v247_v34 }
  0x3e   :  { %472 = vmatprep.subr.mxu0 %v582_v0  ;;  %502 = vmatprep.mubr.msk.f32.mxu0 %vm583_vm0, %v582_v0 }
  0x3f   :  { %473 = vmatpush3.msra.mxu0 %v246_v35 }
  0x40   :  { %474 = vmatprep.subr.mxu0 %v582_v0 }
  0x41   :  { %475 = vmatpush3.msra.mxu0 %v245_v36 }
  0x42   :  { %476 = vmatprep.subr.mxu0 %v582_v0 }
  0x43   :  { %477 = vmatpush3.msra.mxu0 %v244_v37 }
  0x44   :  { %478 = vmatprep.subr.mxu0 %v582_v0 }
  0x45   :  { %479 = vmatpush3.msra.mxu0 %v243_v38 }
  0x46   :  { %480 = vmatprep.subr.mxu0 %v582_v0 }
  0x47   :  { %481 = vmatpush3.msra.mxu0 %v242_v39 }
  0x48   :  { %482 = vmatprep.subr.mxu0 %v582_v0 }
  0x49   :  { %483 = vmatpush3.msra.mxu0 %v241_v40 }
  0x4a   :  { %484 = vmatprep.subr.mxu0 %v582_v0 }
  0x4b   :  { %485 = vmatpush3.msra.mxu0 %v240_v41 }
  0x4c   :  { %486 = vmatprep.subr.mxu0 %v582_v0 }
  0x4d   :  { %487 = vmatpush3.msra.mxu0 %v239_v42 }
  0x4e   :  { %488 = vmatprep.subr.mxu0 %v582_v0 }
  0x4f   :  { %489 = vmatpush3.msra.mxu0 %v238_v43 }
  0x50   :  { %490 = vmatprep.subr.mxu0 %v582_v0 }
  0x51   :  { %491 = vmatpush3.msra.mxu0 %v237_v44 }
  0x52   :  { %492 = vmatprep.subr.mxu0 %v582_v0 }
  0x53   :  { %493 = vmatpush3.msra.mxu0 %v236_v45 }
  0x54   :  { %494 = vmatprep.subr.mxu0 %v582_v0 }
  0x55   :  { %495 = vmatpush3.msra.mxu0 %v235_v46 }
  0x56   :  { %496 = vmatprep.subr.mxu0 %v582_v0 }
  0x57   :  { %497 = vmatpush3.msra.mxu0 %v234_v47 }
  0x58   :  { %498 = vmatprep.subr.mxu0 %v582_v0 }
  0x59   :  { %499 = vmatpush3.msra.mxu0 %v233_v48 }
  0x5a   :  { %500 = vmatprep.subr.mxu0 %v582_v0 }
  0x5b   :  { %501 = vmatpush3.msra.mxu0 %v232_v49 }
  0x5c   :  { %503 = vmatmul.mubr.f32.vlgmr.msra.gmra.mxu0 %v41_v33 }
  0xfc   :  { %v131_v50 = vpop.f32.mrf.mxu0 }
  0xfd   :  { %v226_v51 = vpop.f32.mrf.mxu1  ;;  %v132_v56 = vadd.f32 %v344_v54, %v131_v50 }
  0xfe   :  { %v434_v52 = vpop.f32.mrf.mxu0  ;;  %v227_v57 = vadd.f32 %v346_v55, %v226_v51 }
  0xff   :  { %v469_v53 = vpop.f32.mrf.mxu1 }
 0x100   :  { %v230_v60 = vmax.f32 %v132_v56, %v227_v57 }
 0x11c   :  { %v322_v59 = vpop.f32.mrf.mxu0 }
 0x11d   :  { %v323_v61 = vadd.f32 %v348_v58, %v322_v59 }
 0x11e   :  { %v504_v62 = vpop.f32.mrf.mxu0 }
 0x11f   :  { %v326_v63 = vmax.f32 %v230_v60, %v323_v61 }
 0x121   :  { %327 = vst [vmem:[#allocation7] sm:$0xff] %v326_v63 }
 0x122   :  { %563 = shalt.err (!%p560_p0)
}
 0x123   :  { %337 = dma.vmem_to_hbm [thread:$0]  %s335_s29, 128, %s680_s3, [#allocation4]  }
 0x124   :  { %576 = dma.done.wait [#allocation4], 128  }
 0x125   :  { %577 = vsyncadd [#allocation4], 4294967168 }
 0x126   :  { %341 = vsyncpa [#allocation3], 1 }
 0x127   :  { %342 = vsyncpa [#allocation6], 1 }
 0x128   :  { %343 = vsyncpa [#allocation4], 1 }

</bundles_post_ra>
